<compile_context>
chip_gen: v7x
topology: tpu7x:2x2x1
jax: 0.10.0
libtpu: 0.0.40
codegen_flags: <defaults>
</compile_context>

<pallas_src>
import functools

import jax
import jax.numpy as jnp
from jax import lax
from jax.experimental import pallas as pl
from jax.experimental.pallas import tpu as pltpu


def _round_up(a, b):
    return (a + b - 1) // b * b


def _pick_tm(M, g):
    """M-tile: full (rounded) M when small, else the largest ladder tile whose
    zero-padding waste stays under ~12.5% of M (avoids e.g. M=520 -> 1024)."""
    m_g = _round_up(M, g)
    if m_g <= 512:
        return m_g
    for cand in (512, 256, 128, 64):
        if cand % g == 0 and _round_up(M, cand) - M <= M // 8:
            return cand
    return 64


def _matmul_nt(x, w):
    # x: [tm, tk] contracted with w: [tn, tk] over the last dims -> [tm, tn].
    # Weight stays in the PyTorch [N, K] layout; no wrapper-side transpose.
    return lax.dot_general(x, w, (((1,), (1,)), ((), ())),
                           preferred_element_type=jnp.float32)


def _apply_dropout_mask(bits, x, threshold):
    # Drop iff bits < threshold (uint8 bits, threshold = round(p * 256)).
    # Padded rows see arbitrary bits but their x is zero, so results are
    # unaffected.
    keep = bits.astype(jnp.int32) >= threshold
    return jnp.where(keep, x, jnp.zeros_like(x))


def _finalize(acc, b_ref, o_ref, inv_keep):
    if inv_keep != 1.0:
        # Dropout rescale folded here: f32, once per output tile.
        acc = acc * jnp.float32(inv_keep)
    o_ref[...] = (acc + b_ref[...].astype(jnp.float32)).astype(o_ref.dtype)


# ---------------- fast path: whole weight resident in VMEM -----------------

def _fast_kernel(x_ref, w_ref, b_ref, o_ref, *, inv_keep):
    _finalize(_matmul_nt(x_ref[...], w_ref[...]), b_ref, o_ref, inv_keep)


def _fast_dropout_kernel(bits_ref, x_ref, w_ref, b_ref, o_ref, *,
                         threshold, inv_keep):
    x = _apply_dropout_mask(bits_ref[...], x_ref[...], threshold)
    _finalize(_matmul_nt(x, w_ref[...]), b_ref, o_ref, inv_keep)


# ---------------- tiled path: 3-D grid, K innermost ------------------------

def _accumulate(x, w_ref, b_ref, o_ref, acc_ref, inv_keep):
    k = pl.program_id(2)

    @pl.when(k == 0)
    def _():
        acc_ref[...] = jnp.zeros_like(acc_ref)

    acc_ref[...] += _matmul_nt(x, w_ref[...])

    @pl.when(k == pl.num_programs(2) - 1)
    def _():
        _finalize(acc_ref[...], b_ref, o_ref, inv_keep)


def _tiled_kernel(x_ref, w_ref, b_ref, o_ref, acc_ref, *, inv_keep):
    _accumulate(x_ref[...], w_ref, b_ref, o_ref, acc_ref, inv_keep)


def _tiled_dropout_kernel(bits_ref, x_ref, w_ref, b_ref, o_ref, acc_ref, *,
                          threshold, inv_keep):
    x = _apply_dropout_mask(bits_ref[...], x_ref[...], threshold)
    _accumulate(x, w_ref, b_ref, o_ref, acc_ref, inv_keep)


# ---------------- wrapper ---------------------------------------------------

def linear_transformation(x, weight, bias, *, dropout_rate=0.1, training=False,
                          rng_key=None, force_tiled=False):
    """y = dropout(x) @ weight.T + bias.

    x: [..., K]; weight: [N, K] (PyTorch nn.Linear layout); bias: [N].
    """
    orig_shape = x.shape
    K = orig_shape[-1]
    N, Kw = weight.shape
    assert Kw == K, "weight last dim must match x last dim"
    M = 1
    for d in orig_shape[:-1]:
        M *= d

    dtype = x.dtype
    xsize = jnp.dtype(dtype).itemsize
    wsize = jnp.dtype(weight.dtype).itemsize
    bsize = jnp.dtype(bias.dtype).itemsize

    # ----- dropout configuration -----
    use_dropout = bool(training) and float(dropout_rate) > 0.0
    threshold = 0
    inv_keep = 1.0
    if use_dropout:
        if float(dropout_rate) >= 1.0:
            raise ValueError("dropout_rate must be < 1 in training mode")
        threshold = max(0, min(255, int(round(float(dropout_rate) * 256.0))))
        use_dropout = threshold > 0
    if use_dropout:
        keep_prob = 1.0 - threshold / 256.0      # exact keep prob of the mask
        inv_keep = 1.0 / keep_prob               # -> exactly unbiased rescale
        if rng_key is None:
            rng_key = jax.random.PRNGKey(0)

    # Sublane granule: 8 (f32) / 16 (bf16) / 32 (int8); uint8 mask needs 32.
    g = max(8, 32 // xsize)
    if use_dropout:
        g = 32

    tm = _pick_tm(M, g)
    M_pad = _round_up(M, tm)

    x2 = x.reshape(M, K)
    b2 = bias.reshape(1, N)

    # ----- fast-path decision (double-buffered footprint) -----
    fast_fp = 2 * (tm * K * xsize + N * K * wsize + N * bsize + tm * N * xsize)
    if use_dropout:
        fast_fp += 2 * tm * K
    use_fast = (not force_tiled) and fast_fp <= (32 << 20)

    if use_fast:
        # 1-D grid over M: full (N, K) weight block (fetched once, stays
        # resident), full-K contraction, x / mask streamed exactly once.
        if M_pad != M:
            x2 = jnp.pad(x2, ((0, M_pad - M), (0, 0)))
        grid = (M_pad // tm,)
        x_spec = pl.BlockSpec((tm, K), lambda i: (i, 0))
        w_spec = pl.BlockSpec((N, K), lambda i: (0, 0))
        b_spec = pl.BlockSpec((1, N), lambda i: (0, 0))
        o_spec = pl.BlockSpec((tm, N), lambda i: (i, 0))
        out_shape = jax.ShapeDtypeStruct((M_pad, N), dtype)
        scratch_shapes = []
        dims = ("parallel",)
        if use_dropout:
            bits = jax.random.bits(rng_key, (M_pad, K), dtype=jnp.uint8)
            kernel = functools.partial(_fast_dropout_kernel,
                                       threshold=threshold, inv_keep=inv_keep)
            in_specs = [x_spec, x_spec, w_spec, b_spec]   # bits shares x's spec
            args = (bits, x2, weight, b2)
        else:
            kernel = functools.partial(_fast_kernel, inv_keep=inv_keep)
            in_specs = [x_spec, w_spec, b_spec]
            args = (x2, weight, b2)
        vmem_limit = fast_fp + (4 << 20)
        N_out = N
    else:
        # 3-D grid (M, N, K tiles), K innermost with f32 VMEM accumulator.
        K_pad = _round_up(K, 128)
        N_pad = _round_up(N, 128)
        if N >= 512 and N_pad % 256 != 0:
            N_pad = _round_up(N, 256)            # fill the 256-wide MXU (v6e/v7x)
        tn = 512 if N_pad % 512 == 0 else (256 if N_pad % 256 == 0 else 128)
        tn = min(tn, N_pad)
        tk = 512 if K_pad % 512 == 0 else (256 if K_pad % 256 == 0 else 128)
        tk = min(tk, K_pad)

        if M_pad != M or K_pad != K:
            x2 = jnp.pad(x2, ((0, M_pad - M), (0, K_pad - K)))
        w2 = weight
        if N_pad != N or K_pad != K:
            # TODO(synk): pre-pad the weight at parameter-creation time so this
            # per-call copy disappears.
            w2 = jnp.pad(weight, ((0, N_pad - N), (0, K_pad - K)))
        if N_pad != N:
            b2 = jnp.pad(b2, ((0, 0), (0, N_pad - N)))

        grid = (M_pad // tm, N_pad // tn, K_pad // tk)
        x_spec = pl.BlockSpec((tm, tk), lambda i, j, k: (i, k))
        w_spec = pl.BlockSpec((tn, tk), lambda i, j, k: (j, k))
        b_spec = pl.BlockSpec((1, tn), lambda i, j, k: (0, j))
        o_spec = pl.BlockSpec((tm, tn), lambda i, j, k: (i, j))
        out_shape = jax.ShapeDtypeStruct((M_pad, N_pad), dtype)
        scratch_shapes = [pltpu.VMEM((tm, tn), jnp.float32)]
        dims = ("parallel", "parallel", "arbitrary")

        tile_fp = (2 * (tm * tk * xsize + tn * tk * wsize + tn * bsize
                        + tm * tn * xsize) + tm * tn * 4)
        if use_dropout:
            bits = jax.random.bits(rng_key, (M_pad, K_pad), dtype=jnp.uint8)
            tile_fp += 2 * tm * tk
            kernel = functools.partial(_tiled_dropout_kernel,
                                       threshold=threshold, inv_keep=inv_keep)
            in_specs = [x_spec, x_spec, w_spec, b_spec]   # bits shares x's spec
            args = (bits, x2, w2, b2)
        else:
            kernel = functools.partial(_tiled_kernel, inv_keep=inv_keep)
            in_specs = [x_spec, w_spec, b_spec]
            args = (x2, w2, b2)
        vmem_limit = tile_fp + (4 << 20)
        N_out = N_pad

    # 48 MiB cap: safe on v7x's 64 MiB physical VMEM, ample for <=512 tiles.
    vmem_limit = int(min(max(vmem_limit, 16 << 20), 48 << 20))

    out = pl.pallas_call(
        kernel,
        out_shape=out_shape,
        grid_spec=pltpu.PrefetchScalarGridSpec(
            num_scalar_prefetch=0,
            grid=grid,
            in_specs=in_specs,
            out_specs=o_spec,
            scratch_shapes=scratch_shapes,
        ),
        compiler_params=pltpu.CompilerParams(
            dimension_semantics=dims,
            vmem_limit_bytes=vmem_limit,
        ),
    )(*args)

    if M_pad != M or N_out != N:
        out = out[:M, :N]
    return out.reshape(*orig_shape[:-1], N)


if __name__ == "__main__":
    # Small shapes consistent with the module: batch=2, seq=8,
    # embedding_dim=32, embedding_output_dim=64.
    batch, seq, emb_dim, out_dim = 2, 8, 32, 64

    key = jax.random.PRNGKey(0)
    kx, kw, kb, kd, kx2, kw2, kb2 = jax.random.split(key, 7)

    x = jax.random.normal(kx, (batch, seq, emb_dim), dtype=jnp.float32)
    bound = 1.0 / (emb_dim ** 0.5)
    weight = jax.random.uniform(kw, (out_dim, emb_dim), minval=-bound,
                                maxval=bound, dtype=jnp.float32)
    bias = jax.random.uniform(kb, (out_dim,), minval=-bound, maxval=bound,
                              dtype=jnp.float32)

    # Eval-mode forward (dropout == identity), small-weight fast path.
    y = linear_transformation(x, weight, bias, dropout_rate=0.1, training=False)
    y = jax.block_until_ready(y)
    y_ref = x @ weight.T + bias
    assert y.shape == (batch, seq, out_dim)
    assert jnp.allclose(y, y_ref, atol=1e-4, rtol=1e-4)

    # Training-mode forward (fused uint8 mask; 1/(1-p) folded into f32 finalize).
    y_tr = linear_transformation(x, weight, bias, dropout_rate=0.1,
                                 training=True, rng_key=kd)
    y_tr = jax.block_until_ready(y_tr)
    assert y_tr.shape == (batch, seq, out_dim)
    assert bool(jnp.all(jnp.isfinite(y_tr)))

    # Tiled 3-D-grid path (forced) with non-aligned M/K/N to validate the
    # padding, M-tile ladder and accumulator init/finalize logic.
    M2, K2, N2 = 520, 300, 300
    xb = jax.random.normal(kx2, (M2, K2), dtype=jnp.float32)
    wb = jax.random.uniform(kw2, (N2, K2), minval=-0.05, maxval=0.05,
                            dtype=jnp.float32)
    bb = jax.random.uniform(kb2, (N2,), minval=-0.5, maxval=0.5,
                            dtype=jnp.float32)
    y2 = linear_transformation(xb, wb, bb, dropout_rate=0.1, training=False,
                               force_tiled=True)
    y2 = jax.block_until_ready(y2)
    y2_ref = xb @ wb.T + bb
    assert y2.shape == (M2, N2)
    assert jnp.allclose(y2, y2_ref, atol=3e-2, rtol=3e-2)

    print("KERNEL_OK")
</pallas_src>

<mosaic_0001>
module attributes {stable_mosaic.version = 11 : i64} {
  func.func @_fast_kernel(%arg0: i32, %arg1: memref<16x32xf32, #tpu.memory_space<vmem>>, %arg2: memref<64x32xf32, #tpu.memory_space<vmem>>, %arg3: memref<1x64xf32, #tpu.memory_space<vmem>>, %arg4: memref<16x64xf32, #tpu.memory_space<vmem>>) attributes {dimension_semantics = [#tpu.dimension_semantics<parallel>], iteration_bounds = array<i64: 1>, scalar_prefetch = 0 : i64, scratch_operands = 0 : i64, tpu.core_type = #tpu.core_type<tc>, window_params = [{transform_indices = @transform_0, window_bounds = array<i64: 16, 32>}, {pipeline_mode = #tpu.pipeline_mode<synchronous>, transform_indices = @transform_1, window_bounds = array<i64: 64, 32>}, {pipeline_mode = #tpu.pipeline_mode<synchronous>, transform_indices = @transform_2, window_bounds = array<i64: 1, 64>}, {transform_indices = @transform_3, window_bounds = array<i64: 16, 64>}]} {
    %c0 = arith.constant 0 : index
    %c0_0 = arith.constant 0 : index
    %0 = vector.load %arg1[%c0, %c0_0] : memref<16x32xf32, #tpu.memory_space<vmem>>, vector<16x32xf32>
    %c0_1 = arith.constant 0 : index
    %c0_2 = arith.constant 0 : index
    %1 = vector.load %arg2[%c0_1, %c0_2] : memref<64x32xf32, #tpu.memory_space<vmem>>, vector<64x32xf32>
    %cst = arith.constant dense<0.000000e+00> : vector<16x64xf32>
    %2 = tpu.matmul %0, %1, %cst {dimension_numbers = #tpu.dot_dimension_numbers<[1], [1], [0], [0], [0, 0, 1, 0], [], []>} : vector<16x32xf32>, vector<64x32xf32>, vector<16x64xf32> -> vector<16x64xf32>
    %c0_3 = arith.constant 0 : index
    %c0_4 = arith.constant 0 : index
    %3 = vector.load %arg3[%c0_3, %c0_4] : memref<1x64xf32, #tpu.memory_space<vmem>>, vector<1x64xf32>
    %4 = vector.broadcast %3 : vector<1x64xf32> to vector<16x64xf32>
    %5 = arith.addf %2, %4 : vector<16x64xf32>
    %c0_5 = arith.constant 0 : index
    %c0_6 = arith.constant 0 : index
    %6 = vector.load %arg4[%c0_5, %c0_6] : memref<16x64xf32, #tpu.memory_space<vmem>>, vector<16x64xf32>
    tpu.vector_store %arg4[%c0_5, %c0_6], %5 {strides = array<i32>} : memref<16x64xf32, #tpu.memory_space<vmem>>, vector<16x64xf32>,
    return
  }
  func.func @transform_0(%arg0: i32) -> (i32, i32) {
    %c0_i32 = arith.constant 0 : i32
    %c0_i32_0 = arith.constant 0 : i32
    return %arg0, %c0_i32 : i32, i32
  }
  func.func @transform_1(%arg0: i32) -> (i32, i32) {
    %c0_i32 = arith.constant 0 : i32
    %c0_i32_0 = arith.constant 0 : i32
    %c0_i32_1 = arith.constant 0 : i32
    return %c0_i32, %c0_i32_0 : i32, i32
  }
  func.func @transform_2(%arg0: i32) -> (i32, i32) {
    %c0_i32 = arith.constant 0 : i32
    %c0_i32_0 = arith.constant 0 : i32
    %c0_i32_1 = arith.constant 0 : i32
    return %c0_i32, %c0_i32_0 : i32, i32
  }
  func.func @transform_3(%arg0: i32) -> (i32, i32) {
    %c0_i32 = arith.constant 0 : i32
    %c0_i32_0 = arith.constant 0 : i32
    return %arg0, %c0_i32 : i32, i32
  }
}

</mosaic_0001>

<bundles_post_ra>
// kernel: tpu_custom_call.1
= control target key start
LH: loop header
LB: loop body
LE: loop exit
PB: predicated region body
PF: predicated region fallthrough
CT: control target
= control target key end

     0   :  { %vm32_vm0 = vcmask 261120   ;;  %s340_s0 = inlined_call_operand.vmem [shape: f32[16,32], index: 0, kind: input, shape index: {}]   ;;  %s341_s1 = inlined_call_operand.vmem [shape: f32[64,32], index: 1, kind: input, shape index: {}]   ;;  %s342_s2 = inlined_call_operand.vmem [shape: f32[1,64], index: 2, kind: input, shape index: {}]   ;;  %s343_s3 = inlined_call_operand.hbm [shape: f32[16,64], index: 3, kind: output, shape index: {}]  }
   0x1   :  { %v17_v0 = vld [vmem:[%s341_s1] sm:$0xff]  ;;  %v18_v1 = vld [vmem:[%s341_s1 + $0x8] sm:$0xff]  ;;  %v19_v2 = vld [vmem:[%s341_s1 + $0x10] sm:$0xff] }
   0x2   :  { %v197_v3 = vpack.c.bf16 %v18_v1, %v17_v0  ;;  %vm282_vm1 = vmpackc.low %vm32_vm0, %vm32_vm0  ;;  %v20_v5 = vld [vmem:[%s341_s1 + $0x18] sm:$0xff]  ;;  %v15_v7 = vld [vmem:[%s340_s0] sm:$0xff] }
   0x3   :  { %v203_v6 = vpack.c.bf16 %v20_v5, %v19_v2 }
   0x4   :  { %199 = vmatprep.subr.msk.bf16.mxu0 %vm282_vm1, %v197_v3 }
   0x5   :  { %8 = vsyncpa [#allocation3], 0  ;;  %202 = vmatpush3.bf16.xpose.msk.msra.mxu0 %vm282_vm1, %v197_v3  ;;  %194 = vmatprep.mubr.msk.f32.mxu0 %vm32_vm0, %v15_v7  ;;  %v21_v8 = vld [vmem:[%s341_s1 + $0x20] sm:$0xff]  ;;  %v22_v9 = vld [vmem:[%s341_s1 + $0x28] sm:$0xff]  ;;  %vm138_vm2 = vcmask 523264  }
   0x6   :  { %205 = vmatprep.subr.msk.bf16.mxu0 %vm282_vm1, %v203_v6  ;;  %v209_v10 = vpack.c.bf16 %v22_v9, %v21_v8  ;;  %v23_v11 = vld [vmem:[%s341_s1 + $0x30] sm:$0xff]  ;;  %v24_v12 = vld [vmem:[%s341_s1 + $0x38] sm:$0xff]  ;;  %v16_v14 = vld [vmem:[%s340_s0 + $0x8] sm:$0xff]  ;;  %s248_s1 = smov [#allocation2]  }
   0x7   :  { %v215_v13 = vpack.c.bf16 %v24_v12, %v23_v11  ;;  %v157_v15 = vld [vmem:[%s342_s2] ss:$0 sm:$0xff]  ;;  %s146_s7 = sshll.u32 %s248_s1, 4  ;;  %s147_s7 = int_to_ptr.vmem [resolvable:$true] %s146_s7 }
   0x8   :  { %s224_s8 = scalar_lea.vmem %s147_s7, 256  ;;  %p229_p1 = scmp.lt.s32.totalorder %s147_s7, %s147_s7 }
   0x9   :  { %p225_p0 = scmp.ne.s32.totalorder %s147_s7, %s224_s8  ;;  %p230_p2 = scmp.lt.s32.totalorder %s224_s8, %s224_s8 }
   0xb   :  { %p231_p3 = por %p230_p2, %p229_p1 }
   0xd   :  { %208 = vmatpush3.bf16.xpose.msk.msra.mxu0 %vm282_vm1, %v203_v6  ;;  %p232_p4 = pnand %p231_p3, %p225_p0 }
   0xe   :  { %211 = vmatprep.subr.msk.bf16.mxu0 %vm282_vm1, %v209_v10 }
  0x15   :  { %214 = vmatpush3.bf16.xpose.msk.msra.mxu0 %vm282_vm1, %v209_v10 }
  0x16   :  { %217 = vmatprep.subr.msk.bf16.mxu0 %vm282_vm1, %v215_v13 }
  0x1d   :  { %220 = vmatpush3.bf16.xpose.msk.msra.mxu0 %vm282_vm1, %v215_v13 }
  0x24   :  { %195 = vmatmul.mubr.msk.f32.vlgmr.msra.gmra.mrb[0].mxu0 %vm32_vm0, %v16_v14 }
  0xf7   :  { %v196_v16 = vpop.f32.mrb[0].mxu0 }
  0xf8   :  { %v135_v17 = vadd.f32 %v196_v16, %v157_v15  ;;  %v129_v18 = vpop.f32.mrb[1].mxu0 }
  0xf9   :  { %v130_v19 = vadd.f32 %v157_v15, %v129_v18 }
  0xfa   :  { %140 = vst.msk [vmem:[#allocation2 + $0x8] sm:$0xff] %vm138_vm2, %v135_v17 }
  0xfb   :  { %139 = vst.msk [vmem:[#allocation2] sm:$0xff] %vm138_vm2, %v130_v19 }
  0xfc   :  { %235 = shalt.err (!%p232_p4)
}
  0xfd   :  { %s236_s2 = scalar_lea.hbm %s343_s3, 256 }
  0xfe   :  { %p237_p5 = scmp.ne.s32.totalorder %s343_s3, %s236_s2  ;;  %p240_p6 = scmp.lt.u32.totalorder %s236_s2, %s343_s3 }
 0x100   :  { %p242_p7 = pnand %p240_p6, %p237_p5 }
 0x102   :  { %245 = shalt.err (!%p242_p7)
}
 0x103   :  { %s249_s14 = smov 128   ;;  %s250_s15 = smov 8  }
 0x104   :  { %152 = dma.vmem_to_hbm [thread:$0]  %s147_s7, 256, %s343_s3, [#allocation3], %s249_s14, %s249_s14, %s250_s15  }
 0x105   :  { %246 = dma.done.wait [#allocation3], 256  }
 0x106   :  { %247 = vsyncadd [#allocation3], 4294967040 }
 0x107   :  { %156 = vsyncpa [#allocation3], 1 }

</bundles_post_ra>
